<compile_context>
chip_gen: v6e
topology: v6e:2x2x1
jax: 0.10.0
libtpu: 0.0.40
codegen_flags: <defaults>
</compile_context>

<pallas_src>
import functools

import jax
import jax.numpy as jnp
from jax import lax
from jax.experimental import pallas as pl
from jax.experimental.pallas import tpu as pltpu

BN_EPS = 1e-5
LANE = 128


def _round_up(x, m):
    return (x + m - 1) // m * m


def _make_attention_kernel(*, c_in, inv_hw, kn_off, kernel_num,
                           n_cols_tile, full_cols_last, tail, ragged):
    """Kernel factory; every argument is a trace-time constant."""

    def _add_columns(acc_ref, x_ref, n_cols):
        # Steady state per column: 1 vld (native dtype) + upcast + vadd.
        if n_cols <= 0:
            return
        if n_cols <= 16:
            for c in range(n_cols):                     # static unroll, static slices
                acc_ref[...] += x_ref[:, :, c * LANE:(c + 1) * LANE].astype(jnp.float32)
        else:
            def body(c, carry):
                off = pl.multiple_of(c * LANE, LANE)
                acc_ref[...] += x_ref[:, :, pl.ds(off, LANE)].astype(jnp.float32)
                return carry
            lax.fori_loop(0, n_cols, body, 0)

    def kernel(x_ref, w_fc_ref, bn_bias_ref, w_heads_ref, b_heads_ref,
               out_ref, acc_ref):
        k = pl.program_id(1)
        nk = pl.num_programs(1)

        # ---- init lane-wide accumulator on the first HW tile of this row ----
        @pl.when(k == 0)
        def _():
            acc_ref[...] = jnp.zeros_like(acc_ref)

        # ---- streaming partial sums (no XLU in the steady-state loop) ----
        if not ragged:
            _add_columns(acc_ref, x_ref, n_cols_tile)
        else:
            @pl.when(k < nk - 1)
            def _():
                _add_columns(acc_ref, x_ref, n_cols_tile)

            @pl.when(k == nk - 1)
            def _():
                _add_columns(acc_ref, x_ref, full_cols_last)
                if tail > 0:
                    # out-of-range lanes of the last tile hold unspecified
                    # data; mask them (mask is a trace-time constant shape).
                    off = full_cols_last * LANE
                    lane = lax.broadcasted_iota(jnp.int32, (1, c_in, LANE), 2)
                    xm = jnp.where(
                        lane < tail,
                        x_ref[:, :, off:off + LANE].astype(jnp.float32),
                        0.0)
                    acc_ref[...] += xm

        # ---- epilogue: pool finish + fc + BN(bias) + ReLU + fused heads ----
        @pl.when(k == nk - 1)
        def _():
            # single 128->1 cross-lane reduce, once per batch row
            pooled = jnp.sum(acc_ref[...], axis=-1) * inv_hw            # (1, C_in)

            h = jnp.dot(pooled, w_fc_ref[...],
                        preferred_element_type=jnp.float32) + bn_bias_ref[...]
            h = jnp.maximum(h, 0.0)                                     # (1, A)

            z = jnp.dot(h, w_heads_ref[...],
                        preferred_element_type=jnp.float32) + b_heads_ref[...]

            # columns [kn_off, kn_off+kernel_num) -> softmax; rest -> sigmoid
            col = lax.broadcasted_iota(jnp.int32, z.shape, 1)
            in_kn = (col >= kn_off) & (col < kn_off + kernel_num)
            zk = jnp.where(in_kn, z, jnp.float32(-1e30))
            m = jnp.max(zk, axis=-1, keepdims=True)
            e = jnp.where(in_kn, jnp.exp(z - m), 0.0)
            soft = e / jnp.sum(e, axis=-1, keepdims=True)
            res = jnp.where(in_kn, soft, jax.nn.sigmoid(z))             # (1, N_pad)

            out_ref[...] = res.reshape(out_ref.shape)

    return kernel


def attention_forward(x_nchw, params, *, kernel_size, kernel_num,
                      temperature=1.0):
    B, C_in, H, W = x_nchw.shape
    hw = H * W

    (w_fc, bn_scale, bn_bias, w_ch, b_ch, w_fl, b_fl, w_sp, b_sp,
     w_kn, b_kn) = params

    A = w_fc.shape[1]
    C_out = w_fl.shape[1]
    kk = kernel_size * kernel_size
    total = C_in + C_out + kk + kernel_num
    kn_off = C_in + C_out + kk
    n_pad = _round_up(total, LANE)

    # ---- fold BN scale into fc weight; fold 1/temperature into heads ----
    w_fc_f = (w_fc * bn_scale).astype(jnp.float32)                     # (C_in, A)
    inv_t = 1.0 / float(temperature)
    w_heads = jnp.concatenate([w_ch, w_fl, w_sp, w_kn], axis=1) * inv_t
    b_heads = jnp.concatenate([b_ch, b_fl, b_sp, b_kn], axis=1) * inv_t
    w_heads = jnp.pad(w_heads.astype(jnp.float32),
                      ((0, 0), (0, n_pad - total)))                     # (A, n_pad)
    b_heads = jnp.pad(b_heads.astype(jnp.float32),
                      ((0, 0), (0, n_pad - total)))                     # (1, n_pad)
    bn_bias_f = bn_bias.astype(jnp.float32)

    # ---- tile sizing: stream x in native dtype, no wrapper-side pad/copy ----
    itemsize = jnp.dtype(x_nchw.dtype).itemsize
    per_buffer_budget = 12 * 1024 * 1024       # per x buffer; 2x <= 24 MiB (v7x safe)
    max_lanes = max(LANE, (per_buffer_budget // (C_in * itemsize)) // LANE * LANE)
    hw_tile = min(max_lanes, _round_up(hw, LANE))
    n_hw_blocks = -(-hw // hw_tile)
    rem = hw % hw_tile
    ragged = rem != 0
    n_cols_tile = hw_tile // LANE
    full_cols_last = (rem // LANE) if ragged else n_cols_tile
    tail = (rem % LANE) if ragged else 0

    # (B, C, H, W) -> (B, C, H*W): trailing-dim merge, no data movement.
    x = x_nchw.reshape(B, C_in, hw)

    kernel = _make_attention_kernel(
        c_in=C_in, inv_hw=1.0 / float(hw), kn_off=kn_off,
        kernel_num=kernel_num, n_cols_tile=n_cols_tile,
        full_cols_last=full_cols_last, tail=tail, ragged=ragged)

    cost = pl.CostEstimate(
        flops=int(2 * B * C_in * hw + 2 * B * (C_in * A + A * n_pad)),
        transcendentals=int(B * n_pad),
        bytes_accessed=int(x.size * itemsize + w_fc_f.size * 4
                           + w_heads.size * 4 + b_heads.size * 4
                           + bn_bias_f.size * 4 + B * n_pad * 4),
    )

    out = pl.pallas_call(
        kernel,
        out_shape=jax.ShapeDtypeStruct((B, 1, n_pad), jnp.float32),
        grid_spec=pltpu.PrefetchScalarGridSpec(
            num_scalar_prefetch=0,
            grid=(B, n_hw_blocks),
            in_specs=[
                pl.BlockSpec((1, C_in, hw_tile), lambda b, k: (b, 0, k)),
                pl.BlockSpec((C_in, A), lambda b, k: (0, 0)),
                pl.BlockSpec((1, A), lambda b, k: (0, 0)),
                pl.BlockSpec((A, n_pad), lambda b, k: (0, 0)),
                pl.BlockSpec((1, n_pad), lambda b, k: (0, 0)),
            ],
            out_specs=pl.BlockSpec((1, 1, n_pad), lambda b, k: (b, 0, 0)),
            scratch_shapes=[pltpu.VMEM((1, C_in, LANE), jnp.float32)],
        ),
        compiler_params=pltpu.CompilerParams(
            dimension_semantics=("parallel", "arbitrary"),
            vmem_limit_bytes=48 * 1024 * 1024,
        ),
        cost_estimate=cost,
    )(x, w_fc_f, bn_bias_f, w_heads, b_heads)

    out = out.reshape(B, n_pad)
    ch = out[:, :C_in]
    fl = out[:, C_in:C_in + C_out]
    sp = out[:, C_in + C_out:C_in + C_out + kk]
    kn = out[:, kn_off:kn_off + kernel_num]

    # Same .view() reshapes as the PyTorch module.
    return (ch.reshape(B, -1, 1, 1),
            fl.reshape(B, -1, 1, 1),
            sp.reshape(B, 1, 1, 1, kernel_size, kernel_size),
            kn.reshape(B, kernel_num, 1, 1, 1, 1))


def init_params(key, in_planes, out_planes, kernel_size, kernel_num,
                reduction=0.0625, min_channel=16):
    """Deterministic init mimicking _initialize_weights (kaiming_normal
    fan_out for 1x1 convs, zero biases, identity BN stats)."""
    A = max(int(in_planes * reduction), min_channel)
    kk = kernel_size * kernel_size

    def kaiming(k, in_c, out_c):
        std = (2.0 / out_c) ** 0.5                      # fan_out for a 1x1 conv
        return std * jax.random.normal(k, (in_c, out_c), jnp.float32)

    k0, k1, k2, k3, k4 = jax.random.split(key, 5)
    w_fc = kaiming(k0, in_planes, A)
    # BN (eval): gamma=1, beta=0, running_mean=0, running_var=1
    bn_scale = jnp.full((1, A), 1.0 / jnp.sqrt(1.0 + BN_EPS), jnp.float32)
    bn_bias = jnp.zeros((1, A), jnp.float32)
    w_ch = kaiming(k1, A, in_planes); b_ch = jnp.zeros((1, in_planes), jnp.float32)
    w_fl = kaiming(k2, A, out_planes); b_fl = jnp.zeros((1, out_planes), jnp.float32)
    w_sp = kaiming(k3, A, kk);         b_sp = jnp.zeros((1, kk), jnp.float32)
    w_kn = kaiming(k4, A, kernel_num); b_kn = jnp.zeros((1, kernel_num), jnp.float32)
    return (w_fc, bn_scale, bn_bias, w_ch, b_ch, w_fl, b_fl, w_sp, b_sp, w_kn, b_kn)


def _reference(x_nchw, params, kernel_size, kernel_num, temperature=1.0):
    """Pure-JAX reference for correctness check."""
    (w_fc, bn_scale, bn_bias, w_ch, b_ch, w_fl, b_fl, w_sp, b_sp,
     w_kn, b_kn) = params
    B = x_nchw.shape[0]
    pooled = jnp.mean(x_nchw.astype(jnp.float32), axis=(2, 3))
    h = jnp.maximum(pooled @ w_fc * bn_scale + bn_bias, 0.0)
    ch = jax.nn.sigmoid((h @ w_ch + b_ch) / temperature)
    fl = jax.nn.sigmoid((h @ w_fl + b_fl) / temperature)
    sp = jax.nn.sigmoid((h @ w_sp + b_sp) / temperature)
    kn = jax.nn.softmax((h @ w_kn + b_kn) / temperature, axis=-1)
    return (ch.reshape(B, -1, 1, 1), fl.reshape(B, -1, 1, 1),
            sp.reshape(B, 1, 1, 1, kernel_size, kernel_size),
            kn.reshape(B, kernel_num, 1, 1, 1, 1))


if __name__ == "__main__":
    key = jax.random.PRNGKey(0)
    kx1, kx2, kp = jax.random.split(key, 3)

    B, in_planes, out_planes = 2, 4, 8
    kernel_size, kernel_num = 3, 4
    params = init_params(kp, in_planes, out_planes, kernel_size, kernel_num)
    fwd = functools.partial(attention_forward,
                            kernel_size=kernel_size, kernel_num=kernel_num)

    # case 1: lane-aligned spatial extent (H*W multiple of 128)
    x1 = jax.random.normal(kx1, (B, in_planes, 16, 16), jnp.float32)
    out1 = jax.block_until_ready(fwd(x1, params))
    ref1 = _reference(x1, params, kernel_size, kernel_num)
    for o, r in zip(out1, ref1):
        assert o.shape == r.shape, (o.shape, r.shape)
        assert jnp.allclose(o, r, atol=1e-5, rtol=1e-5)

    # case 2: ragged spatial extent (exercises in-kernel tail masking)
    x2 = jax.random.normal(kx2, (B, in_planes, 11, 13), jnp.float32)
    out2 = jax.block_until_ready(fwd(x2, params))
    ref2 = _reference(x2, params, kernel_size, kernel_num)
    for o, r in zip(out2, ref2):
        assert o.shape == r.shape, (o.shape, r.shape)
        assert jnp.allclose(o, r, atol=1e-5, rtol=1e-5)

    # case 3: native bf16 streaming (upcast to f32 inside the kernel)
    x3 = x1.astype(jnp.bfloat16)
    out3 = jax.block_until_ready(fwd(x3, params))
    ref3 = _reference(x3, params, kernel_size, kernel_num)
    for o, r in zip(out3, ref3):
        assert o.shape == r.shape, (o.shape, r.shape)
        assert jnp.allclose(o, r, atol=1e-5, rtol=1e-5)

    print("KERNEL_OK")
</pallas_src>

<mosaic_0001>
module attributes {stable_mosaic.version = 11 : i64} {
  func.func @kernel(%arg0: i32, %arg1: i32, %arg2: memref<1x4x256xf32, #tpu.memory_space<vmem>>, %arg3: memref<4x16xf32, #tpu.memory_space<vmem>>, %arg4: memref<1x16xf32, #tpu.memory_space<vmem>>, %arg5: memref<16x128xf32, #tpu.memory_space<vmem>>, %arg6: memref<1x128xf32, #tpu.memory_space<vmem>>, %arg7: memref<1x1x128xf32, #tpu.memory_space<vmem>>, %arg8: memref<1x4x128xf32, #tpu.memory_space<vmem>>) attributes {dimension_semantics = [#tpu.dimension_semantics<parallel>, #tpu.dimension_semantics<arbitrary>], iteration_bounds = array<i64: 2, 1>, scalar_prefetch = 0 : i64, scratch_operands = 1 : i64, tpu.core_type = #tpu.core_type<tc>, window_params = [{transform_indices = @transform_0, window_bounds = array<i64: 1, 4, 256>}, {pipeline_mode = #tpu.pipeline_mode<synchronous>, transform_indices = @transform_1, window_bounds = array<i64: 4, 16>}, {pipeline_mode = #tpu.pipeline_mode<synchronous>, transform_indices = @transform_2, window_bounds = array<i64: 1, 16>}, {pipeline_mode = #tpu.pipeline_mode<synchronous>, transform_indices = @transform_3, window_bounds = array<i64: 16, 128>}, {pipeline_mode = #tpu.pipeline_mode<synchronous>, transform_indices = @transform_4, window_bounds = array<i64: 1, 128>}, {transform_indices = @transform_5, window_bounds = array<i64: 1, 1, 128>}]} {
    %c0_i32 = arith.constant 0 : i32
    %0 = arith.cmpi eq, %arg1, %c0_i32 : i32
    %1 = arith.extui %0 : i1 to i32
    %c0_i32_0 = arith.constant 0 : i32
    %2 = arith.cmpi ne, %1, %c0_i32_0 : i32
    scf.if %2 {
      %cst = arith.constant 0.000000e+00 : f32
      %14 = vector.broadcast %cst : f32 to vector<1x4x128xf32>
      %c0_19 = arith.constant 0 : index
      %c0_20 = arith.constant 0 : index
      %c0_21 = arith.constant 0 : index
      %15 = vector.load %arg8[%c0_19, %c0_20, %c0_21] : memref<1x4x128xf32, #tpu.memory_space<vmem>>, vector<1x4x128xf32>
      tpu.vector_store %arg8[%c0_19, %c0_20, %c0_21], %14 {strides = array<i32>} : memref<1x4x128xf32, #tpu.memory_space<vmem>>, vector<1x4x128xf32>,
    } else {
    }
    %c0 = arith.constant 0 : index
    %c0_1 = arith.constant 0 : index
    %c0_2 = arith.constant 0 : index
    %3 = vector.load %arg8[%c0, %c0_1, %c0_2] : memref<1x4x128xf32, #tpu.memory_space<vmem>>, vector<1x4x128xf32>
    %c0_3 = arith.constant 0 : index
    %c0_4 = arith.constant 0 : index
    %c0_5 = arith.constant 0 : index
    %4 = vector.load %arg2[%c0_3, %c0_4, %c0_5] : memref<1x4x256xf32, #tpu.memory_space<vmem>>, vector<1x4x128xf32>
    %5 = arith.addf %3, %4 : vector<1x4x128xf32>
    %c0_6 = arith.constant 0 : index
    %c0_7 = arith.constant 0 : index
    %c0_8 = arith.constant 0 : index
    %6 = vector.load %arg8[%c0_6, %c0_7, %c0_8] : memref<1x4x128xf32, #tpu.memory_space<vmem>>, vector<1x4x128xf32>
    tpu.vector_store %arg8[%c0_6, %c0_7, %c0_8], %5 {strides = array<i32>} : memref<1x4x128xf32, #tpu.memory_space<vmem>>, vector<1x4x128xf32>,
    %c0_9 = arith.constant 0 : index
    %c0_10 = arith.constant 0 : index
    %c0_11 = arith.constant 0 : index
    %7 = vector.load %arg8[%c0_9, %c0_10, %c0_11] : memref<1x4x128xf32, #tpu.memory_space<vmem>>, vector<1x4x128xf32>
    %c0_12 = arith.constant 0 : index
    %c0_13 = arith.constant 0 : index
    %c128 = arith.constant 128 : index
    %8 = vector.load %arg2[%c0_12, %c0_13, %c128] : memref<1x4x256xf32, #tpu.memory_space<vmem>>, vector<1x4x128xf32>
    %9 = arith.addf %7, %8 : vector<1x4x128xf32>
    %c0_14 = arith.constant 0 : index
    %c0_15 = arith.constant 0 : index
    %c0_16 = arith.constant 0 : index
    %10 = vector.load %arg8[%c0_14, %c0_15, %c0_16] : memref<1x4x128xf32, #tpu.memory_space<vmem>>, vector<1x4x128xf32>
    tpu.vector_store %arg8[%c0_14, %c0_15, %c0_16], %9 {strides = array<i32>} : memref<1x4x128xf32, #tpu.memory_space<vmem>>, vector<1x4x128xf32>,
    %c0_i32_17 = arith.constant 0 : i32
    %11 = arith.cmpi eq, %arg1, %c0_i32_17 : i32
    %12 = arith.extui %11 : i1 to i32
    %c0_i32_18 = arith.constant 0 : i32
    %13 = arith.cmpi ne, %12, %c0_i32_18 : i32
    scf.if %13 {
      %c0_19 = arith.constant 0 : index
      %c0_20 = arith.constant 0 : index
      %c0_21 = arith.constant 0 : index
      %14 = vector.load %arg8[%c0_19, %c0_20, %c0_21] : memref<1x4x128xf32, #tpu.memory_space<vmem>>, vector<1x4x128xf32>
      %cst = arith.constant dense<0.000000e+00> : vector<1x4xf32>
      %15 = vector.multi_reduction <add>, %14, %cst [2] : vector<1x4x128xf32> to vector<1x4xf32>
      %cst_22 = arith.constant 3.906250e-03 : f32
      %16 = vector.broadcast %cst_22 : f32 to vector<1x4xf32>
      %17 = arith.mulf %15, %16 : vector<1x4xf32>
      %c0_23 = arith.constant 0 : index
      %c0_24 = arith.constant 0 : index
      %18 = vector.load %arg3[%c0_23, %c0_24] : memref<4x16xf32, #tpu.memory_space<vmem>>, vector<4x16xf32>
      %cst_25 = arith.constant dense<0.000000e+00> : vector<1x16xf32>
      %19 = tpu.matmul %17, %18, %cst_25 {dimension_numbers = #tpu.dot_dimension_numbers<[1], [0], [0], [1], [0, 0, 1, 1], [], []>} : vector<1x4xf32>, vector<4x16xf32>, vector<1x16xf32> -> vector<1x16xf32>
      %c0_26 = arith.constant 0 : index
      %c0_27 = arith.constant 0 : index
      %20 = vector.load %arg4[%c0_26, %c0_27] : memref<1x16xf32, #tpu.memory_space<vmem>>, vector<1x16xf32>
      %21 = arith.addf %19, %20 : vector<1x16xf32>
      %cst_28 = arith.constant 0.000000e+00 : f32
      %22 = vector.broadcast %cst_28 : f32 to vector<1x16xf32>
      %23 = arith.maximumf %21, %22 : vector<1x16xf32>
      %c0_29 = arith.constant 0 : index
      %c0_30 = arith.constant 0 : index
      %24 = vector.load %arg5[%c0_29, %c0_30] : memref<16x128xf32, #tpu.memory_space<vmem>>, vector<16x128xf32>
      %cst_31 = arith.constant dense<0.000000e+00> : vector<1x128xf32>
      %25 = tpu.matmul %23, %24, %cst_31 {dimension_numbers = #tpu.dot_dimension_numbers<[1], [0], [0], [1], [0, 0, 1, 1], [], []>} : vector<1x16xf32>, vector<16x128xf32>, vector<1x128xf32> -> vector<1x128xf32>
      %c0_32 = arith.constant 0 : index
      %c0_33 = arith.constant 0 : index
      %26 = vector.load %arg6[%c0_32, %c0_33] : memref<1x128xf32, #tpu.memory_space<vmem>>, vector<1x128xf32>
      %27 = arith.addf %25, %26 : vector<1x128xf32>
      %28 = tpu.iota {dimensions = array<i32: 1>} : vector<1x128xi32>
      %c21_i32 = arith.constant 21 : i32
      %29 = vector.broadcast %c21_i32 : i32 to vector<1x128xi32>
      %30 = arith.cmpi sge, %28, %29 : vector<1x128xi32>
      %c25_i32 = arith.constant 25 : i32
      %31 = vector.broadcast %c25_i32 : i32 to vector<1x128xi32>
      %32 = arith.cmpi slt, %28, %31 : vector<1x128xi32>
      %33 = arith.andi %30, %32 : vector<1x128xi1>
      %cst_34 = arith.constant -1.000000e+30 : f32
      %34 = vector.broadcast %cst_34 : f32 to vector<1x128xf32>
      %35 = arith.select %33, %27, %34 : vector<1x128xi1>, vector<1x128xf32>
      %cst_35 = arith.constant dense<0xFF800000> : vector<1xf32>
      %36 = vector.multi_reduction <maximumf>, %35, %cst_35 [1] : vector<1x128xf32> to vector<1xf32>
      %37 = vector.shape_cast %36 : vector<1xf32> to vector<1x1xf32>
      %38 = vector.broadcast %37 : vector<1x1xf32> to vector<1x128xf32>
      %39 = arith.subf %27, %38 : vector<1x128xf32>
      %40 = math.exp %39 : vector<1x128xf32>
      %cst_36 = arith.constant 0.000000e+00 : f32
      %41 = vector.broadcast %cst_36 : f32 to vector<1x128xf32>
      %42 = arith.select %33, %40, %41 : vector<1x128xi1>, vector<1x128xf32>
      %cst_37 = arith.constant dense<0.000000e+00> : vector<1xf32>
      %43 = vector.multi_reduction <add>, %42, %cst_37 [1] : vector<1x128xf32> to vector<1xf32>
      %44 = vector.shape_cast %43 : vector<1xf32> to vector<1x1xf32>
      %45 = vector.broadcast %44 : vector<1x1xf32> to vector<1x128xf32>
      %46 = arith.divf %42, %45 : vector<1x128xf32>
      %47 = arith.negf %27 : vector<1x128xf32>
      %48 = math.exp %47 : vector<1x128xf32>
      %cst_38 = arith.constant 1.000000e+00 : f32
      %49 = vector.broadcast %cst_38 : f32 to vector<1x128xf32>
      %50 = arith.addf %49, %48 : vector<1x128xf32>
      %51 = arith.divf %49, %50 : vector<1x128xf32>
      %52 = arith.select %33, %46, %51 : vector<1x128xi1>, vector<1x128xf32>
      %53 = vector.shape_cast %52 : vector<1x128xf32> to vector<1x1x128xf32>
      %c0_39 = arith.constant 0 : index
      %c0_40 = arith.constant 0 : index
      %c0_41 = arith.constant 0 : index
      %54 = vector.load %arg7[%c0_39, %c0_40, %c0_41] : memref<1x1x128xf32, #tpu.memory_space<vmem>>, vector<1x1x128xf32>
      tpu.vector_store %arg7[%c0_39, %c0_40, %c0_41], %53 {strides = array<i32>} : memref<1x1x128xf32, #tpu.memory_space<vmem>>, vector<1x1x128xf32>,
    } else {
    }
    return
  }
  func.func @transform_0(%arg0: i32, %arg1: i32) -> (i32, i32, i32) {
    %c0_i32 = arith.constant 0 : i32
    %c0_i32_0 = arith.constant 0 : i32
    return %arg0, %c0_i32, %arg1 : i32, i32, i32
  }
  func.func @transform_1(%arg0: i32, %arg1: i32) -> (i32, i32) {
    %c0_i32 = arith.constant 0 : i32
    %c0_i32_0 = arith.constant 0 : i32
    %c0_i32_1 = arith.constant 0 : i32
    return %c0_i32, %c0_i32_0 : i32, i32
  }
  func.func @transform_2(%arg0: i32, %arg1: i32) -> (i32, i32) {
    %c0_i32 = arith.constant 0 : i32
    %c0_i32_0 = arith.constant 0 : i32
    %c0_i32_1 = arith.constant 0 : i32
    return %c0_i32, %c0_i32_0 : i32, i32
  }
  func.func @transform_3(%arg0: i32, %arg1: i32) -> (i32, i32) {
    %c0_i32 = arith.constant 0 : i32
    %c0_i32_0 = arith.constant 0 : i32
    %c0_i32_1 = arith.constant 0 : i32
    return %c0_i32, %c0_i32_0 : i32, i32
  }
  func.func @transform_4(%arg0: i32, %arg1: i32) -> (i32, i32) {
    %c0_i32 = arith.constant 0 : i32
    %c0_i32_0 = arith.constant 0 : i32
    %c0_i32_1 = arith.constant 0 : i32
    return %c0_i32, %c0_i32_0 : i32, i32
  }
  func.func @transform_5(%arg0: i32, %arg1: i32) -> (i32, i32, i32) {
    %c0_i32 = arith.constant 0 : i32
    %c0_i32_0 = arith.constant 0 : i32
    %c0_i32_1 = arith.constant 0 : i32
    return %arg0, %c0_i32, %c0_i32_0 : i32, i32, i32
  }
}

</mosaic_0001>

<bundles_post_ra>
// kernel: tpu_custom_call.1
= control target key start
LH: loop header
LB: loop body
LE: loop exit
PB: predicated region body
PF: predicated region fallthrough
CT: control target
= control target key end

     0   :  { %s1137_s0 = inlined_call_operand.hbm [shape: f32[2,4,256], index: 0, kind: input, shape index: {}]   ;;  %s1138_s1 = inlined_call_operand.hbm [shape: f32[4,16], index: 1, kind: input, shape index: {}]   ;;  %s1139_s2 = inlined_call_operand.vmem [shape: f32[1,16], index: 2, kind: input, shape index: {}]   ;;  %s1140_s3 = inlined_call_operand.hbm [shape: f32[16,128], index: 3, kind: input, shape index: {}]   ;;  %s1141_s4 = inlined_call_operand.vmem [shape: f32[1,128], index: 4, kind: input, shape index: {}]   ;;  %s1142_s5 = inlined_call_operand.hbm [shape: f32[2,1,128], index: 5, kind: output, shape index: {}]  }
   0x1   :  { %1147 = sst [smem:[#allocation13_spill]] %s1138_s1 }
   0x2   :  { %10 = vsyncpa [#allocation4], 0 }
   0x3   :  { %12 = vsyncpa [#allocation4 + $0x1], 0 }
   0x4   :  { %13 = vsyncpa [#allocation7], 0 }
   0x5   :  { %14 = vsyncpa [#allocation5], 0 }
   0x6   :  { %16 = vsyncpa [#allocation5 + $0x1], 0  ;;  %s940_s18 = smov 0   ;;  %s942_s19 = smov 0  }
   0x7   :  { %s944_s20 = smov 0   ;;  %s946_s21 = smov 0  }
   0x8   :  { %s948_s22 = smov 0   ;;  %s950_s23 = smov 0  }
   0x9 LB: > { %s603_s24 = sadd.s32 4294967295, %s900_s23   ;;  %s604_s25 = sadd.s32 4294967294, %s900_s23   ;;  %s900_s23 = sphi %s950_s23, %s22_s23   ;;  %s896_s22 = sphi %s948_s22, %s1169_s22   ;;  %s892_s21 = sphi %s946_s21, %s1168_s21   ;;  %s888_s20 = sphi %s944_s20, %s1167_s20   ;;  %s884_s19 = sphi %s942_s19, %s1166_s19   ;;  %s880_s18 = sphi %s940_s18, %s1165_s18  }
   0xa   : > { %p56_p0 = scmp.ne.s32.totalorder %s884_s19, %s880_s18  ;;  %p974_p1 = scmp.eq.s32.totalorder %s603_s24, 0 }
   0xb   : > { %p978_p2 = scmp.eq.s32.totalorder %s603_s24, 1  ;;  %p170_p3 = scmp.eq.s32.totalorder %s604_s25, 1 }
   0xc   : > { %s1148_s26 = scalar_select %p974_p1, 1, 0 }
   0xd   : > { %s1149_s27 = scalar_select %p978_p2, 1, 0 }
   0xe   : > { %p984_p4 = por %p974_p1, %p56_p0  ;;  %p605_p5 = scmp.ge.s32.totalorder %s900_s23, 1 }
   0xf   : > { %p989_p6 = por %p170_p3, %p56_p0  ;;  %p177_p7 = scmp.lt.s32.totalorder %s900_s23, 3 }
  0x10   : > { %s1150_s28 = scalar_select %p984_p4, 1, 0 }
  0x11   : > { %s1151_s29 = scalar_select %p989_p6, 1, 0 }
  0x12   : > { %p994_p8 = pnand %p605_p5, %p177_p7  ;;  %s902_s6 = smov [#allocation6]  }
  0x13   : > { %s190_s7 = sshll.u32 %s902_s6, 4  ;;  %s903_s8 = smov [#allocation8]   ;;  %s191_s7 = int_to_ptr.vmem [resolvable:$true] %s190_s7 }
  0x14   : > { %s1152_s30 = scalar_select %p994_p8, 1, 0 }
  0x15   : > { %p653_p10 = pneg %p994_p8  ;;  %s203_s9 = sshll.u32 %s903_s8, 4  ;;  %s204_s9 = int_to_ptr.vmem [resolvable:$true] %s203_s9 }
  0x16   : > { %s747_s11 = scalar_lea.vmem %s191_s7, 64  ;;  %p755_p5 = scmp.lt.s32.totalorder %s191_s7, %s191_s7 }
  0x17   : > { %p1003_p11 = pnand %p653_p10, %p974_p1  ;;  %p748_p13 = scmp.ne.s32.totalorder %s191_s7, %s747_s11 }
  0x18   : > { %p756_p7 = scmp.lt.s32.totalorder %s747_s11, %s747_s11 }
  0x19   : > { %p738_p12 = pneg %p1003_p11 }
  0x1a   : > { %p757_p9 = por %p756_p7, %p755_p5 }
  0x1b   : > { %p750_p0 = pnand %p748_p13, %p738_p12 }
  0x1d   : > { %p751_p3 = pneg %p750_p0 }
  0x1f   : > { %p758_p6 = pnand %p757_p9, %p751_p3 }
  0x21   : > { %761 = shalt.err (!%p758_p6)
}
  0x22   : > { %s1154_s1 = sld [smem:[#allocation13_spill]]  ;;  %s773_s14 = scalar_lea.vmem %s204_s9, 256 }
  0x23   : > { %p774_p10 = scmp.ne.s32.totalorder %s204_s9, %s773_s14  ;;  %p781_p13 = scmp.lt.s32.totalorder %s204_s9, %s204_s9 }
  0x24   : > { %p782_p0 = scmp.lt.s32.totalorder %s773_s14, %s773_s14 }
  0x25   : > { %p776_p1 = pnand %p774_p10, %p738_p12 }
  0x26   : > { %p783_p8 = por %p782_p0, %p781_p13 }
  0x27   : > { %p777_p4 = pneg %p776_p1 }
  0x28   : > { %656 = dma.hbm_to_vmem [thread:$0]  (!%p1003_p11), %s1154_s1, 64, %s191_s7, [#allocation7]  }
  0x29   : > { %p784_p2 = pnand %p783_p8, %p777_p4 }
  0x2b   : > { %787 = shalt.err (!%p784_p2)
}
  0x2c   : > { %s904_s15 = smov 128   ;;  %s905_s16 = smov 8  }
  0x2d   : > { %659 = dma.hbm_to_vmem [thread:$0]  (!%p1003_p11), %s1140_s3, 256, %s204_s9, [#allocation7], %s904_s15, %s904_s15, %s905_s16  }
  0x2e   : > { %s34_s25 = sadd.s32 1, %s896_s22  ;;  %s43_s6 = sadd.s32 1, %s888_s20 }
  0x2f   : > { %p36_p1 = scmp.ge.s32.totalorder %s34_s25, 2  ;;  %p50_p2 = scmp.ne.s32.totalorder %s888_s20, %s884_s19 }
  0x30   : > { %p51_p4 = scmp.eq.s32.totalorder %s900_s23, 0  ;;  %p670_p6 = scmp.lt.s32.totalorder %s900_s23, 2 }
  0x31   : > { %s1171_s25 = smov (%p36_p1, %s34_s25), 0  ;;  %p1155_p9 = scmp.ne.s32.totalorder %s1149_s27, 0 }
  0x32   : > { %p52_p8 = por %p51_p4, %p50_p2  ;;  %s38_s8 = ssub.s32 %s896_s22, %s1171_s25 }
  0x33   : > { %p1035_p12 = por %p1155_p9, %p50_p2  ;;  %s220_s10 = sand.u32 1, %s888_s20  }
  0x34   : > { %p41_p3 = scmp.eq.s32.totalorder %s38_s8, 0  ;;  %s609_s9 = sshll.u32 %s220_s10, 3 }
  0x35   : > { %s623_s11 = sshll.u32 %s896_s22, 7  ;;  %s224_s16 = scalar_lea.vmem [#allocation3], %s609_s9 }
  0x36   : > { %s1044_s12 = scalar_select %p41_p3, %s888_s20, %s43_s6  }
  0x37   : > { %s232_s15 = scalar_lea.hbm %s1137_s0, %s623_s11  ;;  %s234_s17 = sshll.u32 %s224_s16, 4  ;;  %s235_s17 = int_to_ptr.vmem [resolvable:$true] %s234_s17 }
  0x38   : > { %p1051_p11 = pnand %p670_p6, %p52_p8  ;;  %s221_s24 = scalar_lea.sflag [#allocation4], %s220_s10 }
  0x39   : > { %s801_s8 = scalar_lea.vmem %s235_s17, 128  ;;  %s906_s6 = smov [#allocation3]  }
  0x3a   : > { %p790_p5 = pneg %p1051_p11  ;;  %p802_p7 = scmp.ne.s32.totalorder %s235_s17, %s801_s8 }
  0x3b   : > { %s806_s1 = sshll.u32 %s906_s6, 4  ;;  %s807_s1 = int_to_ptr.vmem [resolvable:$false] %s806_s1 }
  0x3c   : > { %p804_p10 = pnand %p802_p7, %p790_p5  ;;  %s808_s11 = scalar_lea.vmem %s807_s1, 256 }
  0x3d   : > { %p809_p0 = scmp.lt.s32.totalorder %s235_s17, %s807_s1  ;;  %p810_p1 = scmp.lt.s32.totalorder %s808_s11, %s801_s8 }
  0x3e   : > { %p805_p13 = pneg %p804_p10 }
  0x3f   : > { %p811_p2 = por %p810_p1, %p809_p0 }
  0x41   : > { %p812_p4 = pnand %p811_p2, %p805_p13 }
  0x43   : > { %815 = shalt.err (!%p812_p4)
}
  0x44   : > { %663 = dma.hbm_to_vmem [thread:$0]  (!%p1051_p11), %s232_s15, 128, %s235_s17, %s221_s24  }
  0x45   : > { %p1158_p6 = scmp.ne.s32.totalorder %s1152_s30, 0 }
  0x46   : > { %s1062_s10 = sand.u32 (!%p1158_p6), 1, %s884_s19   ;;  %p1159_p8 = scmp.ne.s32.totalorder (!%p1158_p6), %s1150_s28, 0 }
  0x47   : > { %243 = sbr.rel (%p1158_p6) target bundleno = 972 (0x3cc), region = 40  ;;  %s613_s9 = sshll.u32 (!%p1158_p6), %s1062_s10, 3 }
  0x48   : > { %s246_s13 = scalar_lea.sflag (!%p1158_p6), [#allocation4], %s1062_s10  ;;  %s249_s14 = scalar_lea.vmem (!%p1158_p6), [#allocation3], %s613_s9 }
  0x4c   : > { %867 = dma.done.wait (%p1159_p8), %s246_s13, 128  }
  0x4d   : > { %869 = vsyncadd (%p1159_p8), %s246_s13, 4294967168  ;;  %p1160_p9 = scmp.ne.s32.totalorder %s1148_s26, 0 }
  0x4f   : > { %871 = dma.done.wait (%p1160_p9), [#allocation7], 320  }
  0x50   : > { %873 = vsyncadd (%p1160_p9), [#allocation7], 4294966976  ;;  %v907_v0 = vmov 0.0   ;;  %v290_v1 = vld [vmem:[%s249_s14] sm:$0xf]  ;;  %vm301_vm0 = vcmask 1043456   ;;  %v309_v10 = vlaneseq }
  0x51   : > { %288 = vst [vmem:[#allocation2] sm:$0xf] %v907_v0  ;;  %629 = vmatprep.subr.mxu0 %v907_v0  ;;  %634 = vmatprep.subr.mxu1 %v907_v0  ;;  %v294_v4 = vld [vmem:[%s249_s14 + $0x4] sm:$0xf]  ;;  %v306_v9 = vld [vmem:[#allocation6] sm:$0xf] }
  0x52   : > { %630 = vmatpush3.msk.msra.mxu0 %vm301_vm0, %v306_v9  ;;  %vm908_vm1 = vmmov 0   ;;  %v310_v11 = vand.u32 127, %v309_v10  ;;  %v312_v12 = vshrl.u32 %v309_v10, 7  ;;  %vm315_vm2 = vcmask 31744   ;;  %v393_v17 = vld [vmem:[#allocation8 + $0x8] sm:$0xff]  ;;  %v392_v18 = vld [vmem:[#allocation8] sm:$0xff] }
  0x53   : > { %631 = vmatprep.mubr.msk.f32.mxu0 %vm908_vm1, %v907_v0  ;;  %638 = vmatprep.mubr.msk.f32.mxu1 %vm908_vm1, %v907_v0  ;;  %v307_v19 = vld [vmem:[%s1139_s2] sm:$0x1]  ;;  %vm395_vm3 = vcmask 130048   ;;  %vm473_vm7 = vcmask 1040384   ;;  %s620_s15 = sshll.u32 %s892_s21, 4  ;;  %s282_s16 = scalar_lea.vmem [#allocation9], %s1062_s10 }
  0x54   : > { %v313_v13 = vsub.s32 %v310_v11, %v312_v12  ;;  %635 = vmatpush3.msra.mxu1 %v393_v17  ;;  %vm469_vm4 = vcmp.ge.s32.totalorder %v310_v11, 21  ;;  %vm470_vm5 = vcmp.lt.s32.totalorder %v310_v11, 25  ;;  %v394_v24 = vld [vmem:[%s1141_s4] sm:$0x1]  ;;  %s507_s17 = sshll.u32 %s282_s16, 4  ;;  %s1093_s8 = scalar_lea.hbm %s1142_s5, %s620_s15  ;;  %s508_s17 = int_to_ptr.vmem [resolvable:$true] %s507_s17 }
  0x55   : > { %636 = vmatprep.subr.mxu1 %v907_v0  ;;  %vm1080_vm6 = vmand %vm469_vm4, %vm470_vm5  ;;  %s495_s6 = scalar_lea.sflag [#allocation5], %s1062_s10  ;;  %s816_s11 = scalar_lea.vmem %s508_s17, 16 }
  0x56   : > { %637 = vmatpush3.msra.mxu1 %v392_v18  ;;  %p817_p3 = scmp.ne.s32.totalorder %s508_s17, %s816_s11  ;;  %s909_s21 = smov [#allocation9]  }
  0x57   : > { %s820_s9 = sshll.u32 %s909_s21, 4  ;;  %s821_s9 = int_to_ptr.vmem [resolvable:$false] %s820_s9 }
  0x58   : > { %v289_v2 = vld [vmem:[#allocation2] sm:$0xf]  ;;  %p818_p11 = pnand %p817_p3, %p1035_p12  ;;  %s822_s13 = scalar_lea.vmem %s821_s9, 32 }
  0x59   : > { %v291_v3 = vadd.f32 %v290_v1, %v289_v2  ;;  %p823_p7 = scmp.lt.s32.totalorder %s508_s17, %s821_s9  ;;  %p824_p10 = scmp.lt.s32.totalorder %s822_s13, %s816_s11 }
  0x5a   : > { %p819_p5 = pneg %p818_p11 }
  0x5b   : > { %292 = vst [vmem:[#allocation2] sm:$0xf] %v291_v3  ;;  %p825_p13 = por %p824_p10, %p823_p7 }
  0x5d   : > { %p826_p0 = pnand %p825_p13, %p819_p5 }
  0x62   : > { %v293_v5 = vld [vmem:[#allocation2] sm:$0xf] }
  0x63   : > { %v295_v6 = vadd.f32 %v294_v4, %v293_v5 }
  0x65   : > { %296 = vst [vmem:[#allocation2] sm:$0xf] %v295_v6 }
  0x6c   : > { %v300_v7 = vld [vmem:[#allocation2] sm:$0xf] }
  0x6d   : > { %v302_v8 = vsel %vm301_vm0, %v300_v7, 0.0 }
  0x6e   : > { %303 = vadd.xlane.f32.xlu0 %v302_v8 }
  0xf7   : > { %v304_v14 = vpop.xlane.xlu0 %303 }
  0xf8   : > { %v305_v15 = vmul.f32 0.00390625, %v304_v14 }
  0xfa   : > { %v314_v16 = vrot.slane %v305_v15, %v313_v13 }
  0xfc   : > { %632 = vmatmul.mubr.msk.f32.vlgmr.msra.gmra.mxu0 %vm315_vm2, %v314_v16 }
 0x1bc   : > { %v387_v20 = vpop.f32.mrf.mxu0 }
 0x1bd   : > { %v388_v21 = vadd.f32 %v387_v20, %v307_v19 }
 0x1be   : > { %v633_v22 = vpop.f32.mrf.mxu0 }
 0x1bf   : > { %v391_v23 = vmax.f32 %v388_v21, 0.0 }
 0x1c1   : > { %639 = vmatmul.mubr.msk.f32.vlgmr.msra.gmra.mxu1 %vm395_vm3, %v391_v23 }
 0x281   : > { %v465_v25 = vpop.f32.mrf.mxu1 }
 0x282   : > { %v466_v27 = vadd.f32 %v465_v25, %v394_v24 }
 0x283   : > { %v640_v28 = vpop.f32.mrf.mxu1 }
 0x284   : > { %v472_v29 = vsel %vm1080_vm6, %v466_v27, -1e+30  ;;  %v619_v37 = vmul.f32 -1.442695, %v466_v27 }
 0x285   : > { %v474_v30 = vsel %vm473_vm7, %v472_v29, -inf }
 0x286   : > { %475 = vmax.xlane.f32.xlu0 %v474_v30 }
 0x30f   : > { %v476_v31 = vpop.xlane.xlu0 %475 }
 0x310   : > { %v477_v32 = vsub.f32 %v466_v27, %v476_v31 }
 0x312   : > { %v478_v33 = vmul.f32 1.442695, %v477_v32 }
 0x314   : > { %728 = vpow2.f32 %v478_v33 }
 0x315   : > { %730 = vpow2.f32 %v619_v37 }
 0x321   : > { %v729_v34 = vpop.eup %728 }
 0x322   : > { %v480_v35 = vsel %vm1080_vm6, %v729_v34, 0.0  ;;  %v731_v38 = vpop.eup %730 }
 0x323   : > { %v481_v36 = vsel %vm473_vm7, %v480_v35, 0.0  ;;  %v489_v39 = vadd.f32 1.0, %v731_v38 }
 0x324   : > { %482 = vadd.xlane.f32.xlu1 %v481_v36 }
 0x3ad   : > { %v483_v40 = vpop.xlane.xlu1 %482 }
 0x3ae   : > { %732 = vrcp.f32 %v483_v40 }
 0x3af   : > { %734 = vrcp.f32 %v489_v39 }
 0x3bb   : > { %v733_v41 = vpop.eup %732 }
 0x3bc   : > { %v485_v42 = vmul.f32 %v733_v41, %v480_v35  ;;  %v735_v43 = vpop.eup %734 }
 0x3be   : > { %v492_v44 = vsel %vm1080_vm6, %v485_v42, %v735_v43 }
 0x3bf   : > { %493 = vst [vmem:[%s282_s16] sm:$0x1] %v492_v44 }
 0x3c0   : > { %829 = shalt.err (!%p826_p0)
}
 0x3c1   : > { %s830_s14 = scalar_lea.hbm %s1093_s8, 16  ;;  %s834_s26 = scalar_lea.hbm %s1142_s5, 32 }
 0x3c2   : > { %p831_p1 = scmp.ne.s32.totalorder %s1093_s8, %s830_s14  ;;  %p835_p6 = scmp.lt.s32.totalorder %s1093_s8, %s1142_s5 }
 0x3c3   : > { %p836_p8 = scmp.lt.s32.totalorder %s834_s26, %s830_s14 }
 0x3c4   : > { %p832_p2 = pnand %p831_p1, %p1035_p12 }
 0x3c5   : > { %p837_p9 = por %p836_p8, %p835_p6 }
 0x3c6   : > { %p833_p4 = pneg %p832_p2 }
 0x3c8   : > { %p838_p3 = pnand %p837_p9, %p833_p4 }
 0x3ca   : > { %841 = shalt.err (!%p838_p3)
}
 0x3cb   : > { %651 = dma.vmem_to_hbm [thread:$0]  (%p1035_p12), %s508_s17, 16, %s1093_s8, %s495_s6  }
 0x3cc PF: > { %s519_s15 = sand.u32 1, %s880_s18   ;;  %p1163_p11 = scmp.ne.s32.totalorder %s1151_s29, 0 }
 0x3cd   : > { %p1164_p5 = scmp.ge.s32.totalorder %s900_s23, 2  ;;  %s520_s16 = scalar_lea.sflag [#allocation5], %s519_s15 }
 0x3cf   : > { %p665_p7 = pnand %p1164_p5, %p1163_p11 }
 0x3d1   : > { %p666_p10 = pneg %p665_p7 }
 0x3d3   : > { %875 = dma.done.wait (%p666_p10), %s520_s16, 16  }
 0x3d4   : > { %877 = vsyncadd (%p666_p10), %s520_s16, 4294967280  ;;  %s22_s23 = sadd.s32 1, %s900_s23   ;;  %s1165_s18 = smov %s884_s19 }
 0x3d5   : > { %p19_p13 = scmp.ge.s32.totalorder %s22_s23, 4   ;;  %s1166_s19 = smov %s888_s20 }
 0x3d6   : > { %s1167_s20 = smov %s1044_s12  ;;  %s1168_s21 = smov %s896_s22 }
 0x3d7   : > { %s1169_s22 = smov %s1171_s25  ;;  %21 = sbr.rel (!%p19_p13) target bundleno = 9 (0x9), region = 101 }
 0x3dc   :  { %524 = vsyncpa [#allocation4], 1 }
 0x3dd   :  { %526 = vsyncpa [#allocation4 + $0x1], 1 }
 0x3de   :  { %527 = vsyncpa [#allocation7], 1 }
 0x3df   :  { %528 = vsyncpa [#allocation5], 1 }
 0x3e0   :  { %530 = vsyncpa [#allocation5 + $0x1], 1 }

</bundles_post_ra>
